<compile_context>
chip_gen: v5e
topology: v5e:2x2
jax: 0.10.0
libtpu: 0.0.40
codegen_flags: <defaults>
</compile_context>

<pallas_src>
import functools

import jax
import jax.numpy as jnp
from jax.experimental import pallas as pl
from jax.experimental.pallas import tpu as pltpu

N_INPUT = 7
N_OUTPUT = 6
N_H = 2          # -> n_h - 1 = 1 hidden-to-hidden layer
SIZE_H = 128
VAR_EPS = 0.001


def _round_up(x, m):
    return ((x + m - 1) // m) * m


def mlp_kernel(x_ref, w_in_ref, b_in_ref, w_h_ref, b_h_ref,
               w_heads_ref, b_heads_ref, out_ref):
    cdt = w_in_ref.dtype  # MXU operand dtype (bf16 by default)

    # fc_in + relu (bias add / relu in f32)
    x = x_ref[...].astype(cdt)
    h = jnp.dot(x, w_in_ref[...], preferred_element_type=jnp.float32)
    h = jnp.maximum(h + b_in_ref[...], 0.0)

    # hidden layer (fc_list[0]) + relu
    h = jnp.dot(h.astype(cdt), w_h_ref[...], preferred_element_type=jnp.float32)
    h = jnp.maximum(h + b_h_ref[...], 0.0)

    # fused mean|var head: one (SIZE_H, 2*N_OUTPUT) matmul
    y = jnp.dot(h.astype(cdt), w_heads_ref[...],
                preferred_element_type=jnp.float32)
    y = y + b_heads_ref[...]

    # var epilogue (relu + eps) only on the last N_OUTPUT lanes via a lane mask
    col = jax.lax.broadcasted_iota(jnp.int32, y.shape, 1)
    y = jnp.where(col >= N_OUTPUT, jnp.maximum(y, 0.0) + VAR_EPS, y)

    out_ref[...] = y.astype(out_ref.dtype)


def prepare_params(params, compute_dtype=jnp.bfloat16):
    """Fuse the two heads and cast weights to the MXU compute dtype."""
    (w_in, b_in, w_h, b_h, w_mean, b_mean, w_var, b_var) = params
    w_heads = jnp.concatenate([w_mean, w_var], axis=1)   # (SIZE_H, 2*N_OUTPUT)
    b_heads = jnp.concatenate([b_mean, b_var], axis=1)   # (1, 2*N_OUTPUT)
    return (w_in.astype(compute_dtype), b_in,
            w_h.astype(compute_dtype), b_h,
            w_heads.astype(compute_dtype), b_heads)


@functools.partial(jax.jit, static_argnames=("tb",))
def mlp_forward(x, params, tb=512):
    # Glue: flatten to (-1, n_input), same as x.view(-1, self.n_input).
    x2d = x.reshape(-1, N_INPUT).astype(jnp.float32)
    B = x2d.shape[0]

    # Batch tile (multiple of 8 sublanes); pad B to a multiple of TB so the
    # kernel is branch-free.  TB=512 amortizes per-grid-step overhead and keeps
    # the per-step VMEM footprint small even on v7x's 64 MiB VMEM.
    TB = min(tb, _round_up(B, 8))
    B_pad = _round_up(B, TB)
    if B_pad != B:
        x2d = jnp.pad(x2d, ((0, B_pad - B), (0, 0)))

    w_in, b_in, w_h, b_h, w_heads, b_heads = prepare_params(params)

    # Constant index_map -> weight/bias blocks stay resident (no re-DMA).
    def resident(a):
        return pl.BlockSpec(a.shape, lambda i: (0,) * a.ndim)

    packed = pl.pallas_call(
        mlp_kernel,
        out_shape=jax.ShapeDtypeStruct((B_pad, 2 * N_OUTPUT), jnp.float32),
        grid=(B_pad // TB,),
        in_specs=[
            pl.BlockSpec((TB, N_INPUT), lambda i: (i, 0)),
            resident(w_in), resident(b_in),
            resident(w_h), resident(b_h),
            resident(w_heads), resident(b_heads),
        ],
        out_specs=pl.BlockSpec((TB, 2 * N_OUTPUT), lambda i: (i, 0)),
        compiler_params=pltpu.CompilerParams(
            dimension_semantics=("parallel",)),
    )(x2d, w_in, b_in, w_h, b_h, w_heads, b_heads)

    out_mean = packed[:B, :N_OUTPUT]
    out_var = packed[:B, N_OUTPUT:]
    return out_mean, out_var


def init_params(key):
    """Deterministic synthetic init matching the PyTorch shapes.

    PyTorch nn.Linear stores weight as (out, in); we store the transpose
    (in, out) so the kernel computes x @ W + b.
    Weights ~ N(0, 0.02) (as in the module); biases ~ U(-1/sqrt(fan_in),
    1/sqrt(fan_in)) (PyTorch default, left untouched by the module init).
    """
    keys = jax.random.split(key, 8)

    def w(k, n_in, n_out):
        return 0.02 * jax.random.normal(k, (n_in, n_out), dtype=jnp.float32)

    def b(k, n_in, n_out):
        bound = 1.0 / jnp.sqrt(jnp.float32(n_in))
        return jax.random.uniform(k, (1, n_out), dtype=jnp.float32,
                                  minval=-bound, maxval=bound)

    w_in = w(keys[0], N_INPUT, SIZE_H)
    b_in = b(keys[1], N_INPUT, SIZE_H)
    w_h = w(keys[2], SIZE_H, SIZE_H)
    b_h = b(keys[3], SIZE_H, SIZE_H)
    w_mean = w(keys[4], SIZE_H, N_OUTPUT)
    b_mean = b(keys[5], SIZE_H, N_OUTPUT)
    w_var = w(keys[6], SIZE_H, N_OUTPUT)
    b_var = b(keys[7], SIZE_H, N_OUTPUT)
    return (w_in, b_in, w_h, b_h, w_mean, b_mean, w_var, b_var)


def reference_forward(x, params):
    """Pure-f32 reference (exact module semantics)."""
    (w_in, b_in, w_h, b_h, w_mean, b_mean, w_var, b_var) = params
    h = x.reshape(-1, N_INPUT).astype(jnp.float32)
    h = jnp.maximum(h @ w_in + b_in, 0.0)
    h = jnp.maximum(h @ w_h + b_h, 0.0)
    mean = h @ w_mean + b_mean
    var = jnp.maximum(h @ w_var + b_var, 0.0) + VAR_EPS
    return mean, var


def reference_forward_mixed(x, params, compute_dtype=jnp.bfloat16):
    """Reference mimicking the kernel's bf16-operand / f32-accumulate math."""
    w_in, b_in, w_h, b_h, w_heads, b_heads = prepare_params(params, compute_dtype)
    h = x.reshape(-1, N_INPUT).astype(jnp.float32)
    h = jnp.dot(h.astype(compute_dtype), w_in,
                preferred_element_type=jnp.float32)
    h = jnp.maximum(h + b_in, 0.0)
    h = jnp.dot(h.astype(compute_dtype), w_h,
                preferred_element_type=jnp.float32)
    h = jnp.maximum(h + b_h, 0.0)
    y = jnp.dot(h.astype(compute_dtype), w_heads,
                preferred_element_type=jnp.float32) + b_heads
    mean = y[:, :N_OUTPUT]
    var = jnp.maximum(y[:, N_OUTPUT:], 0.0) + VAR_EPS
    return mean, var


if __name__ == "__main__":
    key = jax.random.PRNGKey(0)
    k_x, k_x2, k_p = jax.random.split(key, 3)
    params = init_params(k_p)

    # Small input; forward flattens (2, 4, 7) -> (8, 7).
    x_small = jax.random.normal(k_x, (2, 4, N_INPUT), dtype=jnp.float32)
    m_s, v_s = mlp_forward(x_small, params)
    m_s = jax.block_until_ready(m_s)
    v_s = jax.block_until_ready(v_s)

    # Larger batch exercising the grid + tail padding (B=2100, TB=512, grid=5).
    x_large = jax.random.normal(k_x2, (3, 700, N_INPUT), dtype=jnp.float32)
    m_l, v_l = mlp_forward(x_large, params)
    m_l = jax.block_until_ready(m_l)
    v_l = jax.block_until_ready(v_l)

    for x, m, v in ((x_small, m_s, v_s), (x_large, m_l, v_l)):
        B = x.reshape(-1, N_INPUT).shape[0]
        assert m.shape == (B, N_OUTPUT) and v.shape == (B, N_OUTPUT)
        # Tight check against the bit-for-bit matching mixed-precision math.
        rm, rv = reference_forward_mixed(x, params)
        assert jnp.allclose(m, rm, atol=1e-4, rtol=1e-4)
        assert jnp.allclose(v, rv, atol=1e-4, rtol=1e-4)
        # Loose semantic check against the pure-f32 module forward.
        fm, fv = reference_forward(x, params)
        assert jnp.allclose(m, fm, atol=5e-3, rtol=5e-2)
        assert jnp.allclose(v, fv, atol=5e-3, rtol=5e-2)
        assert bool(jnp.all(v > 0.0))

    print("KERNEL_OK")
</pallas_src>

<mosaic_0001>
module attributes {stable_mosaic.version = 11 : i64} {
  func.func @mlp_kernel(%arg0: i32, %arg1: memref<8x7xf32, #tpu.memory_space<vmem>>, %arg2: memref<7x128xbf16, #tpu.memory_space<vmem>>, %arg3: memref<1x128xf32, #tpu.memory_space<vmem>>, %arg4: memref<128x128xbf16, #tpu.memory_space<vmem>>, %arg5: memref<1x128xf32, #tpu.memory_space<vmem>>, %arg6: memref<128x12xbf16, #tpu.memory_space<vmem>>, %arg7: memref<1x12xf32, #tpu.memory_space<vmem>>, %arg8: memref<8x12xf32, #tpu.memory_space<vmem>>) attributes {dimension_semantics = [#tpu.dimension_semantics<parallel>], iteration_bounds = array<i64: 1>, scalar_prefetch = 0 : i64, scratch_operands = 0 : i64, tpu.core_type = #tpu.core_type<tc>, window_params = [{transform_indices = @transform_0, window_bounds = array<i64: 8, 7>}, {pipeline_mode = #tpu.pipeline_mode<synchronous>, transform_indices = @transform_1, window_bounds = array<i64: 7, 128>}, {pipeline_mode = #tpu.pipeline_mode<synchronous>, transform_indices = @transform_2, window_bounds = array<i64: 1, 128>}, {pipeline_mode = #tpu.pipeline_mode<synchronous>, transform_indices = @transform_3, window_bounds = array<i64: 128, 128>}, {pipeline_mode = #tpu.pipeline_mode<synchronous>, transform_indices = @transform_4, window_bounds = array<i64: 1, 128>}, {pipeline_mode = #tpu.pipeline_mode<synchronous>, transform_indices = @transform_5, window_bounds = array<i64: 128, 12>}, {pipeline_mode = #tpu.pipeline_mode<synchronous>, transform_indices = @transform_6, window_bounds = array<i64: 1, 12>}, {transform_indices = @transform_7, window_bounds = array<i64: 8, 12>}]} {
    %c0 = arith.constant 0 : index
    %c0_0 = arith.constant 0 : index
    %0 = vector.load %arg1[%c0, %c0_0] : memref<8x7xf32, #tpu.memory_space<vmem>>, vector<8x7xf32>
    %1 = arith.truncf %0 : vector<8x7xf32> to vector<8x7xbf16>
    %c0_1 = arith.constant 0 : index
    %c0_2 = arith.constant 0 : index
    %2 = vector.load %arg2[%c0_1, %c0_2] : memref<7x128xbf16, #tpu.memory_space<vmem>>, vector<7x128xbf16>
    %cst = arith.constant dense<0.000000e+00> : vector<8x128xf32>
    %3 = tpu.matmul %1, %2, %cst {dimension_numbers = #tpu.dot_dimension_numbers<[1], [0], [0], [1], [0, 0, 1, 1], [], []>} : vector<8x7xbf16>, vector<7x128xbf16>, vector<8x128xf32> -> vector<8x128xf32>
    %c0_3 = arith.constant 0 : index
    %c0_4 = arith.constant 0 : index
    %4 = vector.load %arg3[%c0_3, %c0_4] : memref<1x128xf32, #tpu.memory_space<vmem>>, vector<1x128xf32>
    %5 = vector.broadcast %4 : vector<1x128xf32> to vector<8x128xf32>
    %6 = arith.addf %3, %5 : vector<8x128xf32>
    %cst_5 = arith.constant 0.000000e+00 : f32
    %7 = vector.broadcast %cst_5 : f32 to vector<8x128xf32>
    %8 = arith.maximumf %6, %7 : vector<8x128xf32>
    %9 = arith.truncf %8 : vector<8x128xf32> to vector<8x128xbf16>
    %c0_6 = arith.constant 0 : index
    %c0_7 = arith.constant 0 : index
    %10 = vector.load %arg4[%c0_6, %c0_7] : memref<128x128xbf16, #tpu.memory_space<vmem>>, vector<128x128xbf16>
    %cst_8 = arith.constant dense<0.000000e+00> : vector<8x128xf32>
    %11 = tpu.matmul %9, %10, %cst_8 {dimension_numbers = #tpu.dot_dimension_numbers<[1], [0], [0], [1], [0, 0, 1, 1], [], []>} : vector<8x128xbf16>, vector<128x128xbf16>, vector<8x128xf32> -> vector<8x128xf32>
    %c0_9 = arith.constant 0 : index
    %c0_10 = arith.constant 0 : index
    %12 = vector.load %arg5[%c0_9, %c0_10] : memref<1x128xf32, #tpu.memory_space<vmem>>, vector<1x128xf32>
    %13 = vector.broadcast %12 : vector<1x128xf32> to vector<8x128xf32>
    %14 = arith.addf %11, %13 : vector<8x128xf32>
    %cst_11 = arith.constant 0.000000e+00 : f32
    %15 = vector.broadcast %cst_11 : f32 to vector<8x128xf32>
    %16 = arith.maximumf %14, %15 : vector<8x128xf32>
    %17 = arith.truncf %16 : vector<8x128xf32> to vector<8x128xbf16>
    %c0_12 = arith.constant 0 : index
    %c0_13 = arith.constant 0 : index
    %18 = vector.load %arg6[%c0_12, %c0_13] : memref<128x12xbf16, #tpu.memory_space<vmem>>, vector<128x12xbf16>
    %cst_14 = arith.constant dense<0.000000e+00> : vector<8x12xf32>
    %19 = tpu.matmul %17, %18, %cst_14 {dimension_numbers = #tpu.dot_dimension_numbers<[1], [0], [0], [1], [0, 0, 1, 1], [], []>} : vector<8x128xbf16>, vector<128x12xbf16>, vector<8x12xf32> -> vector<8x12xf32>
    %c0_15 = arith.constant 0 : index
    %c0_16 = arith.constant 0 : index
    %20 = vector.load %arg7[%c0_15, %c0_16] : memref<1x12xf32, #tpu.memory_space<vmem>>, vector<1x12xf32>
    %21 = vector.broadcast %20 : vector<1x12xf32> to vector<8x12xf32>
    %22 = arith.addf %19, %21 : vector<8x12xf32>
    %23 = tpu.iota {dimensions = array<i32: 1>} : vector<8x12xi32>
    %c6_i32 = arith.constant 6 : i32
    %24 = vector.broadcast %c6_i32 : i32 to vector<8x12xi32>
    %25 = arith.cmpi sge, %23, %24 : vector<8x12xi32>
    %cst_17 = arith.constant 0.000000e+00 : f32
    %26 = vector.broadcast %cst_17 : f32 to vector<8x12xf32>
    %27 = arith.maximumf %22, %26 : vector<8x12xf32>
    %cst_18 = arith.constant 1.000000e-03 : f32
    %28 = vector.broadcast %cst_18 : f32 to vector<8x12xf32>
    %29 = arith.addf %27, %28 : vector<8x12xf32>
    %30 = arith.select %25, %29, %22 : vector<8x12xi1>, vector<8x12xf32>
    %c0_19 = arith.constant 0 : index
    %c0_20 = arith.constant 0 : index
    %31 = vector.load %arg8[%c0_19, %c0_20] : memref<8x12xf32, #tpu.memory_space<vmem>>, vector<8x12xf32>
    tpu.vector_store %arg8[%c0_19, %c0_20], %30 {strides = array<i32>} : memref<8x12xf32, #tpu.memory_space<vmem>>, vector<8x12xf32>,
    return
  }
  func.func @transform_0(%arg0: i32) -> (i32, i32) {
    %c0_i32 = arith.constant 0 : i32
    %c0_i32_0 = arith.constant 0 : i32
    return %arg0, %c0_i32 : i32, i32
  }
  func.func @transform_1(%arg0: i32) -> (i32, i32) {
    %c0_i32 = arith.constant 0 : i32
    %c0_i32_0 = arith.constant 0 : i32
    %c0_i32_1 = arith.constant 0 : i32
    return %c0_i32, %c0_i32_0 : i32, i32
  }
  func.func @transform_2(%arg0: i32) -> (i32, i32) {
    %c0_i32 = arith.constant 0 : i32
    %c0_i32_0 = arith.constant 0 : i32
    %c0_i32_1 = arith.constant 0 : i32
    return %c0_i32, %c0_i32_0 : i32, i32
  }
  func.func @transform_3(%arg0: i32) -> (i32, i32) {
    %c0_i32 = arith.constant 0 : i32
    %c0_i32_0 = arith.constant 0 : i32
    %c0_i32_1 = arith.constant 0 : i32
    return %c0_i32, %c0_i32_0 : i32, i32
  }
  func.func @transform_4(%arg0: i32) -> (i32, i32) {
    %c0_i32 = arith.constant 0 : i32
    %c0_i32_0 = arith.constant 0 : i32
    %c0_i32_1 = arith.constant 0 : i32
    return %c0_i32, %c0_i32_0 : i32, i32
  }
  func.func @transform_5(%arg0: i32) -> (i32, i32) {
    %c0_i32 = arith.constant 0 : i32
    %c0_i32_0 = arith.constant 0 : i32
    %c0_i32_1 = arith.constant 0 : i32
    return %c0_i32, %c0_i32_0 : i32, i32
  }
  func.func @transform_6(%arg0: i32) -> (i32, i32) {
    %c0_i32 = arith.constant 0 : i32
    %c0_i32_0 = arith.constant 0 : i32
    %c0_i32_1 = arith.constant 0 : i32
    return %c0_i32, %c0_i32_0 : i32, i32
  }
  func.func @transform_7(%arg0: i32) -> (i32, i32) {
    %c0_i32 = arith.constant 0 : i32
    %c0_i32_0 = arith.constant 0 : i32
    return %arg0, %c0_i32 : i32, i32
  }
}

</mosaic_0001>

<bundles_post_ra>
// kernel: mlp_forward.1
= control target key start
LH: loop header
LB: loop body
LE: loop exit
PB: predicated region body
PF: predicated region fallthrough
CT: control target
= control target key end

     0   :  { %vm38_vm0 = vcmask 1042432   ;;  %vm39_vm1 = vcmask 1043456   ;;  %v321_v1 = vmov 65535   ;;  %vm34_vm2 = vcmask 56320   ;;  %s428_s1 = inlined_call_operand.vmem [shape: bf16[7,128], index: 1, kind: input, shape index: {}]   ;;  %s429_s0 = inlined_call_operand.vmem [shape: f32[8,7], index: 0, kind: input, shape index: {}]   ;;  %s430_s3 = inlined_call_operand.vmem [shape: bf16[128,128], index: 3, kind: input, shape index: {}]   ;;  %s431_s2 = inlined_call_operand.vmem [shape: f32[1,128], index: 2, kind: input, shape index: {}]   ;;  %s432_s4 = inlined_call_operand.vmem [shape: f32[1,128], index: 4, kind: input, shape index: {}]   ;;  %s433_s5 = inlined_call_operand.vmem [shape: bf16[128,12], index: 5, kind: input, shape index: {}]   ;;  %s434_s6 = inlined_call_operand.vmem [shape: f32[1,12], index: 6, kind: input, shape index: {}]   ;;  %s435_s7 = inlined_call_operand.vmem [shape: f32[8,12], index: 7, kind: output, shape index: {}]  }
   0x1   :  { %v29_v0 = vld [vmem:[%s428_s1] sm:$0xf]  ;;  %v40_v2 = vsel %vm38_vm0, 4294967295, %v321_v1  ;;  %v308_v4 = vld [vmem:[%s430_s3 + $0x38] sm:$0xff]  ;;  %v307_v7 = vld [vmem:[%s430_s3 + $0x30] sm:$0xff]  ;;  %v224_v35 = vlaneseq  ;;  %vm230_vm4 = vcmask 97280  }
   0x2   :  { %v27_v3 = vld [vmem:[%s429_s0] sm:$0xff]  ;;  %v41_v5 = vsel %vm39_vm1, %v40_v2, 0  ;;  %128 = vmatpush.bf16.msra.mxu1 %v308_v4  ;;  %v306_v9 = vld [vmem:[%s430_s3 + $0x28] sm:$0xff]  ;;  %v304_v11 = vld [vmem:[%s430_s3 + $0x18] sm:$0xff] }
   0x3   :  { %v43_v6 = vand.u32 %v41_v5, %v29_v0  ;;  %v28_v8 = vpack.c.bf16 %v27_v3, %v27_v3  ;;  %v305_v10 = vld [vmem:[%s430_s3 + $0x20] sm:$0xff]  ;;  %v303_v12 = vld [vmem:[%s430_s3 + $0x10] sm:$0xff]  ;;  %v302_v13 = vld [vmem:[%s430_s3 + $0x8] sm:$0xff]  ;;  %v225_v38 = vand.u32 127, %v224_v35 }
   0x4   :  { %v301_v14 = vld [vmem:[%s430_s3] sm:$0xff]  ;;  %v316_v15 = vld [vmem:[%s433_s5 + $0x38] sm:$0xff]  ;;  %v315_v16 = vld [vmem:[%s433_s5 + $0x30] sm:$0xff] }
   0x5   :  { %52 = vmatpush.bf16.msra.mxu0 %v43_v6  ;;  %211 = vmatpush.bf16.msra.mxu2 %v316_v15  ;;  %v314_v17 = vld [vmem:[%s433_s5 + $0x28] sm:$0xff]  ;;  %v313_v18 = vld [vmem:[%s433_s5 + $0x20] sm:$0xff]  ;;  %v312_v19 = vld [vmem:[%s433_s5 + $0x18] sm:$0xff]  ;;  %vm226_vm3 = vcmp.ge.s32.totalorder %v225_v38, 6 }
   0x6   :  { %129 = vmatpush.bf16.msra.mxu1 %v307_v7  ;;  %v311_v20 = vld [vmem:[%s433_s5 + $0x10] sm:$0xff]  ;;  %v318_v21 = vld [vmem:[%s431_s2] ss:$0 sm:$0xff]  ;;  %v310_v27 = vld [vmem:[%s433_s5 + $0x8] sm:$0xff] }
   0x7   :  { %v309_v28 = vld [vmem:[%s433_s5] sm:$0xff] }
   0x8   :  { %236 = vmatmul.msk.bf16.vlgmr.msra.gmra.mxu0 %vm34_vm2, %v28_v8  ;;  %v319_v29 = vld [vmem:[%s432_s4] ss:$0 sm:$0xff] }
   0x9   :  { %212 = vmatpush.bf16.msra.mxu2 %v315_v16  ;;  %v320_v36 = vld [vmem:[%s434_s6] ss:$0 sm:$0xff] }
   0xa   :  { %130 = vmatpush.bf16.msra.mxu1 %v306_v9 }
   0xd   :  { %213 = vmatpush.bf16.msra.mxu2 %v314_v17 }
   0xe   :  { %131 = vmatpush.bf16.msra.mxu1 %v305_v10 }
  0x11   :  { %214 = vmatpush.bf16.msra.mxu2 %v313_v18 }
  0x12   :  { %132 = vmatpush.bf16.msra.mxu1 %v304_v11 }
  0x15   :  { %215 = vmatpush.bf16.msra.mxu2 %v312_v19 }
  0x16   :  { %133 = vmatpush.bf16.msra.mxu1 %v303_v12 }
  0x19   :  { %216 = vmatpush.bf16.msra.mxu2 %v311_v20 }
  0x1a   :  { %134 = vmatpush.bf16.msra.mxu1 %v302_v13 }
  0x1d   :  { %217 = vmatpush.bf16.msra.mxu2 %v310_v27 }
  0x1e   :  { %135 = vmatpush.bf16.msra.mxu1 %v301_v14 }
  0x21   :  { %218 = vmatpush.bf16.msra.mxu2 %v309_v28 }
  0x85   :  { %v54_v22 = vpop.f32.mrf.mxu0 }
  0x86   :  { %v55_v23 = vadd.f32 %v318_v21, %v54_v22 }
  0x88   :  { %v58_v24 = vmax.f32 %v55_v23, 0.0 }
  0x8a   :  { %v59_v25 = vpack.c.bf16 %v58_v24, %v58_v24 }
  0x8c   :  { %136 = vmatmul.bf16.vlgmr.msra.gmra.mxu1 %v59_v25 }
  0x8d   :  { %v56_v26 = vpop.f32.mrf.mxu0 }
 0x109   :  { %v137_v30 = vpop.f32.mrf.mxu1 }
 0x10a   :  { %v138_v31 = vadd.f32 %v319_v29, %v137_v30 }
 0x10c   :  { %v141_v32 = vmax.f32 %v138_v31, 0.0 }
 0x10e   :  { %v142_v33 = vpack.c.bf16 %v141_v32, %v141_v32 }
 0x110   :  { %219 = vmatmul.bf16.vlgmr.msra.gmra.mxu2 %v142_v33 }
 0x111   :  { %v139_v34 = vpop.f32.mrf.mxu1 }
 0x193   :  { %v220_v37 = vpop.f32.mrf.mxu2 }
 0x194   :  { %v221_v39 = vadd.f32 %v320_v36, %v220_v37 }
 0x196   :  { %v227_v40 = vmax.f32 %v221_v39, 0.0 }
 0x198   :  { %v228_v41 = vadd.f32 0.001, %v227_v40 }
 0x19a   :  { %v229_v42 = vsel %vm226_vm3, %v228_v41, %v221_v39 }
 0x19b   :  { %231 = vst.msk [vmem:[%s435_s7] sm:$0xff] %vm230_vm4, %v229_v42  ;;  %v222_v43 = vpop.f32.mrf.mxu2 }

</bundles_post_ra>
